<compile_context>
chip_gen: v7x
topology: tpu7x:2x2x1
jax: 0.10.0
libtpu: 0.0.40
codegen_flags: <defaults>
</compile_context>

<pallas_src>
import jax
import jax.numpy as jnp
from jax import lax
from jax.experimental import pallas as pl
from jax.experimental.pallas import tpu as pltpu


def _round_up(n: int, m: int) -> int:
    return ((n + m - 1) // m) * m


def _vmem_capacity_bytes() -> int:
    """Physical VMEM per core (used for generation-specific block sizing)."""
    try:
        info = pltpu.get_tpu_info()
        for name in ("vmem_capacity_bytes", "vmem_bytes", "vmem_size_bytes"):
            v = getattr(info, name, None)
            if v:
                return int(v)
    except Exception:
        pass
    return 64 * 1024 * 1024  # conservative default (v7x physical VMEM)


def classification_head(x, weight, bias, *, block_target_bytes=None):
    """x: (B, S, D); weight: (C, D) (PyTorch nn.Linear layout); bias: (C,)."""
    B, S, D = x.shape
    C = weight.shape[0]
    out_dtype = x.dtype
    x_item = jnp.dtype(x.dtype).itemsize
    w_item = jnp.dtype(weight.dtype).itemsize
    o_item = jnp.dtype(out_dtype).itemsize

    # Lane-dense class (output / matmul-N) dim; weight/bias/output are tiny so
    # padding them is negligible, unlike padding x.
    C_pad = _round_up(C, 128)

    # --- batch tile (grid axis 0, "parallel") ---
    # Ensure >= 2 batch blocks whenever B >= 2 so both v7x TensorCores get work.
    if B >= 16:
        TB = 8
    elif B >= 2:
        TB = max(1, B // 2)
    else:
        TB = 1
        # Single-example batches leave one v7x core idle; splitting S across
        # cores with a combine epilogue is possible but not worth it here.
    NB = pl.cdiv(B, TB)

    # --- VMEM budget & x block target (generation specific) ---
    vmem_cap = _vmem_capacity_bytes()
    vmem_limit = max(32 * 1024 * 1024,
                     min((vmem_cap * 3) // 4, 100 * 1024 * 1024))
    resident = (2 * D * C_pad * w_item      # weight (pipeline double-buffers it)
                + 2 * C_pad * 4             # bias
                + TB * D * 4                # f32 accumulator scratch
                + 2 * TB * C_pad * o_item)  # output blocks
    if block_target_bytes is None:
        block_target_bytes = min(
            8 * 1024 * 1024,
            max(512 * 1024, (vmem_limit - resident - (2 << 20)) // 2))

    # --- sequence tile (grid axis 1, reduction) ---
    row_bytes = TB * D * x_item
    ts_cap = max(8, (block_target_bytes // max(1, row_bytes)) // 8 * 8)

    # Weight: one-time HBM transpose/pad to (D, C_pad) -> no per-tile transpose
    # inside the kernel, rhs contracts on dim 0 (native MXU orientation).
    w_p = jnp.pad(weight, ((0, C_pad - C), (0, 0))).T          # (D, C_pad)
    b_p = jnp.pad(bias, (0, C_pad - C)).reshape(1, C_pad)      # (1, C_pad)

    inv_s = 1.0 / float(S)  # static; folded in once at finalize

    def _matmul_store(pooled, w_ref, b_ref, o_ref):
        w = w_ref[...]
        lhs = pooled if w.dtype == jnp.float32 else pooled.astype(w.dtype)
        logits = lax.dot_general(lhs, w,
                                 dimension_numbers=(((1,), (0,)), ((), ())),
                                 preferred_element_type=jnp.float32)
        o_ref[0] = (logits + b_ref[...].astype(jnp.float32)).astype(o_ref.dtype)

    if S <= ts_cap:
        # ---------------- single S-tile fast path ----------------
        def kernel(x_ref, w_ref, b_ref, o_ref):
            pooled = jnp.sum(x_ref[...].astype(jnp.float32), axis=1) * inv_s
            _matmul_store(pooled, w_ref, b_ref, o_ref)

        out = pl.pallas_call(
            kernel,
            out_shape=jax.ShapeDtypeStruct((NB, TB, C_pad), out_dtype),
            grid=(NB,),
            in_specs=[
                pl.BlockSpec((TB, S, D), lambda b: (b, 0, 0)),
                pl.BlockSpec((D, C_pad), lambda b: (0, 0)),    # VMEM-resident
                pl.BlockSpec((1, C_pad), lambda b: (0, 0)),    # VMEM-resident
            ],
            out_specs=pl.BlockSpec((1, TB, C_pad), lambda b: (b, 0, 0)),
            compiler_params=pltpu.CompilerParams(
                dimension_semantics=("parallel",),
                vmem_limit_bytes=vmem_limit,
            ),
        )(x, w_p, b_p)
    else:
        # ---------------- S-reduction path ----------------
        # Prefer a TS that divides S (no masking); otherwise mask the last tile.
        TS = None
        cap = min(ts_cap, (S // 8) * 8)
        for cand in range(cap, 7, -8):
            if S % cand == 0:
                TS = cand
                break
        if TS is None:
            TS = ts_cap
        n_s = pl.cdiv(S, TS)
        needs_mask = (S % TS) != 0

        def kernel(x_ref, w_ref, b_ref, o_ref, acc_ref):
            si = pl.program_id(1)

            @pl.when(si == 0)
            def _():
                acc_ref[...] = jnp.zeros_like(acc_ref)

            xb = x_ref[...].astype(jnp.float32)                # (TB, TS, D)
            if needs_mask:
                rows = lax.broadcasted_iota(jnp.int32, (1, TS, 1), 1)
                xb = jnp.where(rows < (S - si * TS), xb, 0.0)
            acc_ref[...] += jnp.sum(xb, axis=1)                # (TB, D)

            @pl.when(si == n_s - 1)
            def _():
                pooled = acc_ref[...] * inv_s
                _matmul_store(pooled, w_ref, b_ref, o_ref)

        out = pl.pallas_call(
            kernel,
            out_shape=jax.ShapeDtypeStruct((NB, TB, C_pad), out_dtype),
            grid=(NB, n_s),
            in_specs=[
                pl.BlockSpec((TB, TS, D), lambda b, s: (b, s, 0)),
                pl.BlockSpec((D, C_pad), lambda b, s: (0, 0)),   # VMEM-resident
                pl.BlockSpec((1, C_pad), lambda b, s: (0, 0)),   # VMEM-resident
            ],
            out_specs=pl.BlockSpec((1, TB, C_pad), lambda b, s: (b, 0, 0)),
            scratch_shapes=[pltpu.VMEM((TB, D), jnp.float32)],
            compiler_params=pltpu.CompilerParams(
                dimension_semantics=("parallel", "arbitrary"),
                vmem_limit_bytes=vmem_limit,
            ),
        )(x, w_p, b_p)

    return out.reshape(NB * TB, C_pad)[:B, :C]


def classification_head_ref(x, weight, bias):
    pooled = jnp.mean(x, axis=1)
    return pooled @ weight.T + bias


if __name__ == "__main__":
    def check(B, S, D, C, key, block_target_bytes=None):
        kx, kw, kb = jax.random.split(key, 3)
        x = jax.random.normal(kx, (B, S, D), dtype=jnp.float32)
        bound = 1.0 / float(D) ** 0.5  # nn.Linear init range
        weight = jax.random.uniform(kw, (C, D), minval=-bound, maxval=bound,
                                    dtype=jnp.float32)
        bias = jax.random.uniform(kb, (C,), minval=-bound, maxval=bound,
                                  dtype=jnp.float32)
        out = jax.block_until_ready(
            classification_head(x, weight, bias,
                                block_target_bytes=block_target_bytes))
        ref = classification_head_ref(x, weight, bias)
        assert out.shape == (B, C)
        assert jnp.allclose(out, ref, atol=1e-5, rtol=1e-5)

    key = jax.random.PRNGKey(0)
    k1, k2, k3 = jax.random.split(key, 3)

    # config: embedding_dim = 32, num_classes = 10
    check(2, 8, 32, 10, k1)                            # single-S-tile fast path
    check(4, 64, 32, 10, k2, block_target_bytes=4096)  # S-reduction path
    check(5, 60, 32, 10, k3, block_target_bytes=4096)  # masked last S tile + partial B tile

    print("KERNEL_OK")
</pallas_src>

<mosaic_0001>
module attributes {stable_mosaic.version = 11 : i64} {
  func.func @kernel(%arg0: i32, %arg1: memref<1x8x32xf32, #tpu.memory_space<vmem>>, %arg2: memref<32x128xf32, #tpu.memory_space<vmem>>, %arg3: memref<1x128xf32, #tpu.memory_space<vmem>>, %arg4: memref<1x1x128xf32, #tpu.memory_space<vmem>>) attributes {dimension_semantics = [#tpu.dimension_semantics<parallel>], iteration_bounds = array<i64: 2>, scalar_prefetch = 0 : i64, scratch_operands = 0 : i64, tpu.core_type = #tpu.core_type<tc>, window_params = [{transform_indices = @transform_0, window_bounds = array<i64: 1, 8, 32>}, {pipeline_mode = #tpu.pipeline_mode<synchronous>, transform_indices = @transform_1, window_bounds = array<i64: 32, 128>}, {pipeline_mode = #tpu.pipeline_mode<synchronous>, transform_indices = @transform_2, window_bounds = array<i64: 1, 128>}, {transform_indices = @transform_3, window_bounds = array<i64: 1, 1, 128>}]} {
    %c0 = arith.constant 0 : index
    %c0_0 = arith.constant 0 : index
    %c0_1 = arith.constant 0 : index
    %0 = vector.load %arg1[%c0, %c0_0, %c0_1] : memref<1x8x32xf32, #tpu.memory_space<vmem>>, vector<1x8x32xf32>
    %cst = arith.constant dense<0.000000e+00> : vector<1x32xf32>
    %1 = vector.multi_reduction <add>, %0, %cst [1] : vector<1x8x32xf32> to vector<1x32xf32>
    %cst_2 = arith.constant 1.250000e-01 : f32
    %2 = vector.broadcast %cst_2 : f32 to vector<1x32xf32>
    %3 = arith.mulf %1, %2 : vector<1x32xf32>
    %c0_3 = arith.constant 0 : index
    %c0_4 = arith.constant 0 : index
    %4 = vector.load %arg2[%c0_3, %c0_4] : memref<32x128xf32, #tpu.memory_space<vmem>>, vector<32x128xf32>
    %cst_5 = arith.constant dense<0.000000e+00> : vector<1x128xf32>
    %5 = tpu.matmul %3, %4, %cst_5 {dimension_numbers = #tpu.dot_dimension_numbers<[1], [0], [0], [1], [0, 0, 1, 1], [], []>} : vector<1x32xf32>, vector<32x128xf32>, vector<1x128xf32> -> vector<1x128xf32>
    %c0_6 = arith.constant 0 : index
    %c0_7 = arith.constant 0 : index
    %6 = vector.load %arg3[%c0_6, %c0_7] : memref<1x128xf32, #tpu.memory_space<vmem>>, vector<1x128xf32>
    %7 = arith.addf %5, %6 : vector<1x128xf32>
    %c0_8 = arith.constant 0 : index
    %c0_9 = arith.constant 0 : index
    %c0_10 = arith.constant 0 : index
    %8 = vector.load %arg4[%c0_8, %c0_9, %c0_10] : memref<1x1x128xf32, #tpu.memory_space<vmem>>, vector<1x1x128xf32>
    %9 = vector.shape_cast %8 : vector<1x1x128xf32> to vector<1x128xf32>
    %10 = vector.shape_cast %7 : vector<1x128xf32> to vector<1x1x128xf32>
    tpu.vector_store %arg4[%c0_8, %c0_9, %c0_10], %10 {strides = array<i32>} : memref<1x1x128xf32, #tpu.memory_space<vmem>>, vector<1x1x128xf32>,
    return
  }
  func.func @transform_0(%arg0: i32) -> (i32, i32, i32) {
    %c0_i32 = arith.constant 0 : i32
    %c0_i32_0 = arith.constant 0 : i32
    %c0_i32_1 = arith.constant 0 : i32
    return %arg0, %c0_i32, %c0_i32_0 : i32, i32, i32
  }
  func.func @transform_1(%arg0: i32) -> (i32, i32) {
    %c0_i32 = arith.constant 0 : i32
    %c0_i32_0 = arith.constant 0 : i32
    %c0_i32_1 = arith.constant 0 : i32
    return %c0_i32, %c0_i32_0 : i32, i32
  }
  func.func @transform_2(%arg0: i32) -> (i32, i32) {
    %c0_i32 = arith.constant 0 : i32
    %c0_i32_0 = arith.constant 0 : i32
    %c0_i32_1 = arith.constant 0 : i32
    return %c0_i32, %c0_i32_0 : i32, i32
  }
  func.func @transform_3(%arg0: i32) -> (i32, i32, i32) {
    %c0_i32 = arith.constant 0 : i32
    %c0_i32_0 = arith.constant 0 : i32
    %c0_i32_1 = arith.constant 0 : i32
    return %arg0, %c0_i32, %c0_i32_0 : i32, i32, i32
  }
}

</mosaic_0001>

<bundles_post_ra>
// kernel: tpu_custom_call.1
= control target key start
LH: loop header
LB: loop body
LE: loop exit
PB: predicated region body
PF: predicated region fallthrough
CT: control target
= control target key end

     0   :  { %8 = vsyncpa [#allocation3], 0  ;;  %s835_s0 = inlined_call_operand.hbm [shape: f32[2,8,32], index: 0, kind: input, shape index: {}]   ;;  %s836_s1 = inlined_call_operand.hbm [shape: f32[32,128], index: 1, kind: input, shape index: {}]   ;;  %s837_s2 = inlined_call_operand.vmem [shape: f32[1,128], index: 2, kind: input, shape index: {}]   ;;  %s838_s3 = inlined_call_operand.hbm [shape: f32[2,1,128], index: 3, kind: output, shape index: {}]  }
   0x1   :  { %10 = vsyncpa [#allocation3 + $0x1], 0 }
   0x2   :  { %11 = vsyncpa [#allocation6], 0 }
   0x3   :  { %12 = vsyncpa [#allocation4], 0 }
   0x4   :  { %14 = vsyncpa [#allocation4 + $0x1], 0  ;;  %s633_s12 = smov 0   ;;  %s635_s13 = smov 0  }
   0x5   :  { %s637_s14 = smov 0   ;;  %s639_s15 = smov 0  }
   0x6 LB: > { %s654_s16 = sadd.s32 4294967295, %s603_s15   ;;  %s378_s17 = sadd.s32 4294967294, %s603_s15   ;;  %s603_s15 = sphi %s639_s15, %s858_s15   ;;  %s599_s14 = sphi %s637_s14, %s857_s14   ;;  %s595_s13 = sphi %s635_s13, %s856_s13   ;;  %s591_s12 = sphi %s633_s12, %s855_s12  }
   0x7   : > { %p40_p0 = scmp.ne.s32.totalorder %s595_s13, %s591_s12  ;;  %p839_p1 = scmp.eq.s32.totalorder %s654_s16, 0 }
   0x8   : > { %p112_p3 = scmp.eq.s32.totalorder %s378_s17, 1  ;;  %p379_p5 = scmp.ge.s32.totalorder %s603_s15, 1 }
   0x9   : > { %p663_p4 = por %p839_p1, %p40_p0  ;;  %p119_p7 = scmp.lt.s32.totalorder %s603_s15, 3 }
   0xa   : > { %p668_p6 = por %p112_p3, %p40_p0  ;;  %s605_s21 = smov [#allocation5]  }
   0xb   : > { %s842_s18 = scalar_select %p663_p4, 1, 0 }
   0xc   : > { %s843_s19 = scalar_select %p668_p6, 1, 0 }
   0xd   : > { %p673_p8 = pnand %p379_p5, %p119_p7  ;;  %s131_s22 = sshll.u32 %s605_s21, 4  ;;  %s677_s22 = int_to_ptr.vmem [resolvable:$true] %s131_s22 }
   0xe   : > { %s689_s24 = sadd.s32 1, %s603_s15   ;;  %s27_s25 = sadd.s32 1, %s599_s14 }
   0xf   : > { %s844_s20 = scalar_select %p673_p8, 1, 0 }
  0x10   : > { %p421_p9 = pneg %p673_p8  ;;  %s24_s26 = ssub.s32 %s603_s15, %s689_s24 }
  0x11   : > { %s475_s29 = scalar_lea.hbm %s836_s1, 512 }
  0x12   : > { %p684_p11 = pnand %p421_p9, %p839_p1  ;;  %p476_p12 = scmp.ne.s32.totalorder %s836_s1, %s475_s29 }
  0x13   : > { %p482_p5 = scmp.lt.u32.totalorder %s475_s29, %s836_s1 }
  0x14   : > { %p477_p13 = pneg %p684_p11 }
  0x16   : > { %p478_p0 = pnand %p477_p13, %p476_p12 }
  0x18   : > { %p479_p3 = pneg %p478_p0 }
  0x1a   : > { %p484_p7 = pnand %p482_p5, %p479_p3 }
  0x1c   : > { %487 = shalt.err (!%p484_p7)
}
  0x1d   : > { %s488_s7 = scalar_lea.vmem %s677_s22, 512  ;;  %p496_p2 = scmp.lt.s32.totalorder %s677_s22, %s677_s22 }
  0x1e   : > { %p489_p9 = scmp.ne.s32.totalorder %s677_s22, %s488_s7  ;;  %p497_p6 = scmp.lt.s32.totalorder %s488_s7, %s488_s7 }
  0x20   : > { %p491_p10 = pnand %p489_p9, %p477_p13  ;;  %p498_p4 = por %p497_p6, %p496_p2 }
  0x22   : > { %p492_p1 = pneg %p491_p10 }
  0x24   : > { %p499_p8 = pnand %p498_p4, %p492_p1 }
  0x26   : > { %502 = shalt.err (!%p499_p8)
}
  0x27   : > { %s606_s8 = smov 128   ;;  %s607_s9 = smov 8  }
  0x28   : > { %424 = dma.hbm_to_vmem [thread:$0]  (!%p684_p11), %s836_s1, 512, %s677_s22, [#allocation6], %s606_s8, %s606_s8, %s607_s9  }
  0x29   : > { %p25_p2 = scmp.eq.s32.totalorder %s24_s26, 0  ;;  %p34_p1 = scmp.ne.s32.totalorder %s599_s14, %s595_s13 }
  0x2a   : > { %p35_p4 = scmp.eq.s32.totalorder %s603_s15, 0  ;;  %p434_p6 = scmp.lt.s32.totalorder %s603_s15, 2 }
  0x2b   : > { %s720_s17 = scalar_select %p25_p2, %s599_s14, %s27_s25  }
  0x2c   : > { %p36_p8 = por %p35_p4, %p34_p1  ;;  %p846_p10 = scmp.eq.s32.totalorder %s654_s16, 1 }
  0x2d   : > { %s148_s27 = sand.u32 1, %s599_s14   ;;  %s383_s28 = sshll.u32 %s603_s15, 7 }
  0x2e   : > { %p724_p12 = por %p846_p10, %p34_p1  ;;  %s382_s29 = sshll.u32 %s148_s27, 3 }
  0x2f   : > { %s733_s4 = scalar_lea.hbm %s835_s0, %s383_s28  ;;  %s152_s22 = scalar_lea.vmem [#allocation2], %s382_s29 }
  0x30   : > { %s159_s25 = sshll.u32 %s152_s22, 4  ;;  %p735_p11 = pnand %p434_p6, %p36_p8  ;;  %s739_s25 = int_to_ptr.vmem [resolvable:$true] %s159_s25 }
  0x31   : > { %s149_s5 = scalar_lea.sflag [#allocation3], %s148_s27  ;;  %s503_s6 = scalar_lea.hbm %s733_s4, 128 }
  0x32   : > { %p504_p13 = scmp.ne.s32.totalorder %s733_s4, %s503_s6  ;;  %p505_p0 = pneg %p735_p11 }
  0x33   : > { %s508_s9 = scalar_lea.hbm %s835_s0, 256  ;;  %p509_p7 = scmp.lt.u32.totalorder %s733_s4, %s835_s0 }
  0x34   : > { %p506_p3 = pnand %p505_p0, %p504_p13  ;;  %p510_p9 = scmp.lt.u32.totalorder %s508_s9, %s503_s6 }
  0x35   : > { %p512_p1 = scmp.lt.u32.totalorder %s503_s6, %s733_s4 }
  0x36   : > { %p507_p5 = pneg %p506_p3  ;;  %p511_p2 = por %p510_p9, %p509_p7 }
  0x38   : > { %p513_p4 = por %p512_p1, %p511_p2 }
  0x3a   : > { %p514_p6 = pnand %p513_p4, %p507_p5 }
  0x3c   : > { %517 = shalt.err (!%p514_p6)
}
  0x3d   : > { %s518_s27 = scalar_lea.vmem %s739_s25, 128  ;;  %s608_s28 = smov [#allocation2]  }
  0x3e   : > { %p519_p8 = scmp.ne.s32.totalorder %s739_s25, %s518_s27  ;;  %s523_s29 = sshll.u32 %s608_s28, 4  ;;  %s524_s29 = int_to_ptr.vmem [resolvable:$false] %s523_s29 }
  0x3f   : > { %s525_s23 = scalar_lea.vmem %s524_s29, 256  ;;  %p526_p3 = scmp.lt.s32.totalorder %s739_s25, %s524_s29 }
  0x40   : > { %p521_p10 = pnand %p519_p8, %p505_p0  ;;  %p527_p7 = scmp.lt.s32.totalorder %s525_s23, %s518_s27 }
  0x42   : > { %p522_p13 = pneg %p521_p10  ;;  %p528_p9 = por %p527_p7, %p526_p3 }
  0x44   : > { %p529_p2 = pnand %p528_p9, %p522_p13 }
  0x46   : > { %532 = shalt.err (!%p529_p2)
}
  0x47   : > { %428 = dma.hbm_to_vmem [thread:$0]  (!%p735_p11), %s733_s4, 128, %s739_s25, %s149_s5  }
  0x48   : > { %p849_p5 = scmp.ne.s32.totalorder %s844_s20, 0 }
  0x49   : > { %s769_s30 = sand.u32 (!%p849_p5), 1, %s595_s13   ;;  %p850_p0 = scmp.ne.s32.totalorder (!%p849_p5), %s842_s18, 0 }
  0x4a   : > { %168 = sbr.rel (%p849_p5) target bundleno = 331 (0x14b), region = 32  ;;  %s385_s22 = sshll.u32 (!%p849_p5), %s769_s30, 3 }
  0x4b   : > { %s171_s6 = scalar_lea.sflag (!%p849_p5), [#allocation3], %s769_s30  ;;  %s174_s7 = scalar_lea.vmem (!%p849_p5), [#allocation2], %s385_s22 }
  0x51   : > { %578 = dma.done.wait (%p850_p0), %s171_s6, 128  }
  0x52   : > { %580 = vsyncadd (%p850_p0), %s171_s6, 4294967168  ;;  %p851_p1 = scmp.eq.s32.totalorder %s654_s16, 0 }
  0x54   : > { %582 = dma.done.wait (%p851_p1), [#allocation6], 512   ;;  %p852_p11 = pmov %p851_p1 }
  0x55   : > { %v609_v0 = vmov 0.0|0.0   ;;  %vm610_vm0 = vmmov 0   ;;  %v611_v1 = vmov 0.0   ;;  %vm201_vm1 = vcmask 261120   ;;  %v210_v2 = vld [vmem:[#allocation5] sm:$0xff]  ;;  %v211_v3 = vld [vmem:[#allocation5 + $0x8] sm:$0xff] }
  0x56   : > { %584 = vsyncadd (%p852_p11), [#allocation6], 4294966784  ;;  %407 = vmatprep.subr.bf16.mxu0 %v609_v0  ;;  %404 = vmatprep.mubr.msk.f32.mxu0 %vm610_vm0, %v611_v1  ;;  %v212_v4 = vld [vmem:[#allocation5 + $0x10] sm:$0xff]  ;;  %v408_v5 = vpack.c.bf16 %v211_v3, %v210_v2  ;;  %v213_v6 = vld [vmem:[#allocation5 + $0x18] sm:$0xff]  ;;  %s388_s4 = sshll.u32 %s654_s16, 4  ;;  %s199_s25 = scalar_lea.vmem [#allocation7], %s769_s30 }
  0x57   : > { %v200_v7 = vld [vmem:[%s174_s7] sm:$0xff]  ;;  %v411_v9 = vpack.c.bf16 %v213_v6, %v212_v4  ;;  %s302_s26 = sshll.u32 %s199_s25, 4  ;;  %s791_s9 = scalar_lea.hbm %s838_s3, %s388_s4  ;;  %s793_s26 = int_to_ptr.vmem [resolvable:$true] %s302_s26 }
  0x58   : > { %v202_v8 = vsel %vm201_vm1, %v200_v7, 0.0  ;;  %409 = vmatpush3.bf16.msra.mxu0 %v408_v5  ;;  %v214_v17 = vld [vmem:[%s837_s2] sm:$0x1]  ;;  %s290_s10 = scalar_lea.sflag [#allocation4], %s769_s30  ;;  %s533_s11 = scalar_lea.vmem %s793_s26, 16 }
  0x59   : > { %v203_v10 = vrot.slane %v202_v8, 4  ;;  %410 = vmatprep.subr.bf16.mxu0 %v609_v0  ;;  %p534_p4 = scmp.ne.s32.totalorder %s793_s26, %s533_s11  ;;  %s612_s16 = smov [#allocation7]  }
  0x5a   : > { %s537_s27 = sshll.u32 %s612_s16, 4  ;;  %s538_s27 = int_to_ptr.vmem [resolvable:$false] %s537_s27 }
  0x5b   : > { %v204_v11 = vadd.f32 %v203_v10, %v202_v8  ;;  %p535_p6 = pnand %p534_p4, %p724_p12  ;;  %s539_s28 = scalar_lea.vmem %s538_s27, 32 }
  0x5c   : > { %412 = vmatpush3.bf16.msra.mxu0 %v411_v9  ;;  %p540_p10 = scmp.lt.s32.totalorder %s793_s26, %s538_s27  ;;  %p541_p13 = scmp.lt.s32.totalorder %s539_s28, %s533_s11 }
  0x5d   : > { %v205_v12 = vrot.slane %v204_v11, 2  ;;  %p536_p8 = pneg %p535_p6 }
  0x5e   : > { %p542_p3 = por %p541_p13, %p540_p10 }
  0x5f   : > { %v206_v13 = vadd.f32 %v205_v12, %v204_v11 }
  0x60   : > { %p543_p7 = pnand %p542_p3, %p536_p8 }
  0x61   : > { %v207_v14 = vrot.slane %v206_v13, 1 }
  0x63   : > { %v208_v15 = vadd.f32 %v207_v14, %v206_v13 }
  0x65   : > { %v209_v16 = vmul.f32 0.125, %v208_v15 }
  0x67   : > { %405 = vmatmul.mubr.msk.f32.vlgmr.msra.gmra.mrb[0].mxu0 %vm201_vm1, %v209_v16 }
 0x13a   : > { %v284_v18 = vpop.f32.mrb[0].mxu0 }
 0x13b   : > { %v285_v19 = vadd.f32 %v284_v18, %v214_v17  ;;  %v406_v20 = vpop.f32.mrb[1].mxu0 }
 0x13d   : > { %288 = vst [vmem:[%s199_s25] sm:$0x1] %v285_v19 }
 0x13e   : > { %546 = shalt.err (!%p543_p7)
}
 0x13f   : > { %s547_s29 = scalar_lea.hbm %s791_s9, 16  ;;  %s551_s22 = scalar_lea.hbm %s838_s3, 32 }
 0x140   : > { %p548_p9 = scmp.ne.s32.totalorder %s791_s9, %s547_s29  ;;  %p552_p0 = scmp.lt.u32.totalorder %s791_s9, %s838_s3 }
 0x141   : > { %p553_p1 = scmp.lt.u32.totalorder %s551_s22, %s547_s29  ;;  %p555_p4 = scmp.lt.u32.totalorder %s547_s29, %s791_s9 }
 0x142   : > { %p549_p2 = pnand %p548_p9, %p724_p12 }
 0x143   : > { %p554_p11 = por %p553_p1, %p552_p0 }
 0x144   : > { %p550_p5 = pneg %p549_p2 }
 0x145   : > { %p556_p6 = por %p555_p4, %p554_p11 }
 0x147   : > { %p557_p8 = pnand %p556_p6, %p550_p5 }
 0x149   : > { %560 = shalt.err (!%p557_p8)
}
 0x14a   : > { %419 = dma.vmem_to_hbm [thread:$0]  (%p724_p12), %s793_s26, 16, %s791_s9, %s290_s10  }
 0x14b PF: > { %s314_s18 = sand.u32 1, %s591_s12   ;;  %p853_p10 = scmp.ne.s32.totalorder %s843_s19, 0 }
 0x14c   : > { %p854_p13 = scmp.ge.s32.totalorder %s603_s15, 2  ;;  %s315_s20 = scalar_lea.sflag [#allocation4], %s314_s18 }
 0x14e   : > { %p430_p3 = pnand %p854_p13, %p853_p10 }
 0x150   : > { %586 = dma.done.wait (!%p430_p3), %s315_s20, 16  }
 0x151   : > { %588 = vsyncadd (!%p430_p3), %s315_s20, 4294967280  ;;  %p17_p7 = scmp.ge.s32.totalorder %s689_s24, 4   ;;  %s855_s12 = smov %s595_s13 }
 0x152   : > { %s856_s13 = smov %s599_s14  ;;  %s857_s14 = smov %s720_s17 }
 0x153   : > { %s858_s15 = smov %s689_s24  ;;  %19 = sbr.rel (!%p17_p7) target bundleno = 6 (0x6), region = 81 }
 0x15a   :  { %319 = vsyncpa [#allocation3], 1 }
 0x15b   :  { %321 = vsyncpa [#allocation3 + $0x1], 1 }
 0x15c   :  { %322 = vsyncpa [#allocation6], 1 }
 0x15d   :  { %323 = vsyncpa [#allocation4], 1 }
 0x15e   :  { %325 = vsyncpa [#allocation4 + $0x1], 1 }

</bundles_post_ra>
